<compile_context>
chip_gen: v6e
topology: v6e:2x2x1
jax: 0.10.0
libtpu: 0.0.40
codegen_flags: <defaults>
</compile_context>

<pallas_src>
import functools

import jax
import jax.numpy as jnp
from jax.experimental import pallas as pl
from jax.experimental.pallas import tpu as pltpu


def _label_smoothing_kernel(x_ref, t_ref, out_ref, *, confidence, smooth_val):
    # x_ref  : (1, C, T) logits block -- class axis on sublanes, lanes dense.
    # t_ref  : (1, 1, T) integer targets.
    # out_ref: (1, 1, 8, 128) lane-dense per-step partial-sum slab.
    x = x_ref[...].astype(jnp.float32)                            # (1, C, T)
    C = x.shape[1]

    # Numerically-stable log_softmax pieces over the class (sublane) axis.
    m = jnp.max(x, axis=1, keepdims=True)                         # (1, 1, T)
    s = x - m                                                      # (1, C, T)
    lse = jnp.log(jnp.sum(jnp.exp(s), axis=1))                     # (1, T)

    # Gather s at the target class via a one-hot compare.  The iota is a single
    # (1, C, 1) column broadcast against the targets (one vreg, not C*T/1024).
    tgt = t_ref[...].astype(jnp.int32)                             # (1, 1, T)
    cls_ids = jax.lax.broadcasted_iota(jnp.int32, (1, C, 1), 1)    # (1, C, 1)
    mask = cls_ids == tgt                                          # (1, C, T)
    s_t = jnp.sum(jnp.where(mask, s, 0.0), axis=1)                 # (1, T)
    sum_s = jnp.sum(s, axis=1)                                     # (1, T)

    # Closed form using (confidence - sv) + sv*C == 1:
    #   loss = lse - (confidence - sv) * s_t - sv * sum_s
    loss = lse - (confidence - smooth_val) * s_t - smooth_val * sum_s  # (1, T)

    # Per-step partial sum; splat into a lane-dense (8,128) slab so the store
    # is a plain unmasked vst.  The wrapper reads element [0, 0] of each slab.
    partial = jnp.sum(loss)
    out_ref[...] = jnp.full(out_ref.shape, partial, dtype=jnp.float32)


def _pick_tile(S, C, logit_itemsize, tgt_itemsize, vmem_budget_bytes):
    """Largest lane-aligned tile dividing S whose double-buffered working set
    (logits + targets blocks) stays under the VMEM budget."""
    if S % 128 != 0:
        return S  # full-extent fallback (Pallas accepts full-dim blocks).
    per_lane = 2 * (C * logit_itemsize + tgt_itemsize)  # 2x = double buffering
    max_lanes = max(128, (vmem_budget_bytes // per_lane) // 128 * 128)
    best = 128
    for k in range(1, S // 128 + 1):
        t = 128 * k
        if S % t == 0 and t <= max_lanes:
            best = t
    return best


def label_smoothing_loss(logits_ncs, targets_ns, *, smoothing=0.0,
                         tile_hw=None, vmem_budget_bytes=12 * 1024 * 1024):
    """logits_ncs: (B, C, S) float (f32 or bf16), class axis second.
       targets_ns: (B, S) integer class indices.  Returns scalar mean loss."""
    B, C, S = logits_ncs.shape
    assert C >= 2, "label smoothing needs at least 2 classes"

    logit_itemsize = jnp.dtype(logits_ncs.dtype).itemsize
    tgt_itemsize = jnp.dtype(targets_ns.dtype).itemsize
    if tile_hw is None:
        tile = _pick_tile(S, C, logit_itemsize, tgt_itemsize, vmem_budget_bytes)
    else:
        tile = min(tile_hw, S)
    assert S % tile == 0, "S must be a multiple of the tile size"
    assert tile % 128 == 0 or tile == S, "tile must be lane-aligned or full-extent"

    confidence = 1.0 - smoothing
    smooth_val = smoothing / (C - 1)
    targets_3d = targets_ns.reshape(B, 1, S)
    num_tiles = S // tile

    # Each grid step writes its own (8,128) partial slab -> no carried state,
    # so both grid axes are safely "parallel" (2-TC sharding on v7x).
    partials = pl.pallas_call(
        functools.partial(
            _label_smoothing_kernel,
            confidence=float(confidence),
            smooth_val=float(smooth_val),
        ),
        out_shape=jax.ShapeDtypeStruct((B, num_tiles, 8, 128), jnp.float32),
        grid_spec=pltpu.PrefetchScalarGridSpec(
            num_scalar_prefetch=0,
            grid=(B, num_tiles),
            in_specs=[
                pl.BlockSpec((1, C, tile), lambda b, j: (b, 0, j)),
                pl.BlockSpec((1, 1, tile), lambda b, j: (b, 0, j)),
            ],
            out_specs=pl.BlockSpec((1, 1, 8, 128), lambda b, j: (b, j, 0, 0)),
        ),
        compiler_params=pltpu.CompilerParams(
            dimension_semantics=("parallel", "parallel")),
    )(logits_ncs, targets_3d)

    # Final reduction + mean in the wrapper (tiny: B * num_tiles scalars).
    return jnp.sum(partials[:, :, 0, 0]) / jnp.float32(B * S)


def label_smoothing_reference(logits_nchw, targets_bhw, smoothing):
    """Plain-JAX mirror of the PyTorch module on (N, C) class-last pred."""
    B, C, H, W = logits_nchw.shape
    pred = jnp.transpose(logits_nchw, (0, 2, 3, 1)).reshape(-1, C)
    target = targets_bhw.reshape(-1)
    logp = jax.nn.log_softmax(pred.astype(jnp.float32), axis=-1)
    confidence = 1.0 - smoothing
    true_dist = jnp.full_like(logp, smoothing / (C - 1))
    true_dist = true_dist.at[jnp.arange(target.shape[0]), target].set(confidence)
    return jnp.mean(jnp.sum(-true_dist * logp, axis=-1))


if __name__ == "__main__":
    # Synthetic segmentation-sized problem: B=2, C=8 classes, H=W=32.
    B, C, H, W = 2, 8, 32, 32
    smoothing = 0.1
    key = jax.random.PRNGKey(0)
    k_logits, k_tgt = jax.random.split(key)

    logits_nchw = jax.random.normal(k_logits, (B, C, H, W), dtype=jnp.float32)
    targets_bhw = jax.random.randint(k_tgt, (B, H, W), 0, C, dtype=jnp.int32)

    # Host glue: keep NCHW -- only reshape so class stays on sublanes and the
    # spatial axis is lane-dense (no NHWC transpose / extra HBM pass).
    logits_ncs = logits_nchw.reshape(B, C, H * W)
    targets_ns = targets_bhw.reshape(B, H * W)

    # tile_hw=256 here just to exercise the multi-tile partial-sum path at this
    # toy size; real segmentation shapes should use the VMEM-aware default
    # (tile_hw=None), which picks tiles in the multi-MiB-per-buffer range.
    loss = label_smoothing_loss(logits_ncs, targets_ns,
                                smoothing=smoothing, tile_hw=256)
    loss = jax.block_until_ready(loss)

    ref = label_smoothing_reference(logits_nchw, targets_bhw, smoothing)
    assert jnp.allclose(loss, ref, rtol=1e-5, atol=1e-5), (loss, ref)

    print("KERNEL_OK")
</pallas_src>

<mosaic_0001>
module attributes {stable_mosaic.version = 11 : i64} {
  func.func @_label_smoothing_kernel(%arg0: i32, %arg1: i32, %arg2: memref<1x8x256xf32, #tpu.memory_space<vmem>>, %arg3: memref<1x1x256xi32, #tpu.memory_space<vmem>>, %arg4: memref<1x1x8x128xf32, #tpu.memory_space<vmem>>) attributes {dimension_semantics = [#tpu.dimension_semantics<parallel>, #tpu.dimension_semantics<parallel>], iteration_bounds = array<i64: 2, 4>, scalar_prefetch = 0 : i64, scratch_operands = 0 : i64, tpu.core_type = #tpu.core_type<tc>, window_params = [{transform_indices = @transform_0, window_bounds = array<i64: 1, 8, 256>}, {transform_indices = @transform_1, window_bounds = array<i64: 1, 1, 256>}, {transform_indices = @transform_2, window_bounds = array<i64: 1, 1, 8, 128>}]} {
    %c0 = arith.constant 0 : index
    %c0_0 = arith.constant 0 : index
    %c0_1 = arith.constant 0 : index
    %0 = vector.load %arg2[%c0, %c0_0, %c0_1] : memref<1x8x256xf32, #tpu.memory_space<vmem>>, vector<1x8x256xf32>
    %cst = arith.constant dense<0xFF800000> : vector<1x256xf32>
    %1 = vector.multi_reduction <maximumf>, %0, %cst [1] : vector<1x8x256xf32> to vector<1x256xf32>
    %2 = vector.shape_cast %1 : vector<1x256xf32> to vector<1x1x256xf32>
    %3 = vector.broadcast %2 : vector<1x1x256xf32> to vector<1x8x256xf32>
    %4 = arith.subf %0, %3 : vector<1x8x256xf32>
    %5 = math.exp %4 : vector<1x8x256xf32>
    %cst_2 = arith.constant dense<0.000000e+00> : vector<1x256xf32>
    %6 = vector.multi_reduction <add>, %5, %cst_2 [1] : vector<1x8x256xf32> to vector<1x256xf32>
    %7 = math.log %6 : vector<1x256xf32>
    %c0_3 = arith.constant 0 : index
    %c0_4 = arith.constant 0 : index
    %c0_5 = arith.constant 0 : index
    %8 = vector.load %arg3[%c0_3, %c0_4, %c0_5] : memref<1x1x256xi32, #tpu.memory_space<vmem>>, vector<1x1x256xi32>
    %9 = tpu.iota {dimensions = array<i32: 1>} : vector<1x8x1xi32>
    %10 = vector.broadcast %9 : vector<1x8x1xi32> to vector<1x8x256xi32>
    %11 = vector.broadcast %8 : vector<1x1x256xi32> to vector<1x8x256xi32>
    %12 = arith.cmpi eq, %10, %11 : vector<1x8x256xi32>
    %cst_6 = arith.constant 0.000000e+00 : f32
    %13 = vector.broadcast %cst_6 : f32 to vector<1x8x256xf32>
    %14 = arith.select %12, %4, %13 : vector<1x8x256xi1>, vector<1x8x256xf32>
    %cst_7 = arith.constant dense<0.000000e+00> : vector<1x256xf32>
    %15 = vector.multi_reduction <add>, %14, %cst_7 [1] : vector<1x8x256xf32> to vector<1x256xf32>
    %cst_8 = arith.constant dense<0.000000e+00> : vector<1x256xf32>
    %16 = vector.multi_reduction <add>, %4, %cst_8 [1] : vector<1x8x256xf32> to vector<1x256xf32>
    %cst_9 = arith.constant 0.885714293 : f32
    %17 = vector.broadcast %cst_9 : f32 to vector<1x256xf32>
    %18 = arith.mulf %17, %15 : vector<1x256xf32>
    %19 = arith.subf %7, %18 : vector<1x256xf32>
    %cst_10 = arith.constant 0.0142857144 : f32
    %20 = vector.broadcast %cst_10 : f32 to vector<1x256xf32>
    %21 = arith.mulf %20, %16 : vector<1x256xf32>
    %22 = arith.subf %19, %21 : vector<1x256xf32>
    %23 = vector.shape_cast %22 : vector<1x256xf32> to vector<1x1x256xf32>
    %cst_11 = arith.constant dense<0.000000e+00> : vector<1xf32>
    %24 = vector.multi_reduction <add>, %23, %cst_11 [1, 2] : vector<1x1x256xf32> to vector<1xf32>
    %25 = vector.shape_cast %24 : vector<1xf32> to vector<1x1x1xf32>
    %26 = vector.extract %25[0, 0, 0] : f32 from vector<1x1x1xf32>
    %27 = vector.broadcast %26 : f32 to vector<1x1x8x128xf32>
    %c0_12 = arith.constant 0 : index
    %c0_13 = arith.constant 0 : index
    %c0_14 = arith.constant 0 : index
    %c0_15 = arith.constant 0 : index
    %28 = vector.load %arg4[%c0_12, %c0_13, %c0_14, %c0_15] : memref<1x1x8x128xf32, #tpu.memory_space<vmem>>, vector<1x1x8x128xf32>
    tpu.vector_store %arg4[%c0_12, %c0_13, %c0_14, %c0_15], %27 {strides = array<i32>} : memref<1x1x8x128xf32, #tpu.memory_space<vmem>>, vector<1x1x8x128xf32>,
    return
  }
  func.func @transform_0(%arg0: i32, %arg1: i32) -> (i32, i32, i32) {
    %c0_i32 = arith.constant 0 : i32
    %c0_i32_0 = arith.constant 0 : i32
    return %arg0, %c0_i32, %arg1 : i32, i32, i32
  }
  func.func @transform_1(%arg0: i32, %arg1: i32) -> (i32, i32, i32) {
    %c0_i32 = arith.constant 0 : i32
    %c0_i32_0 = arith.constant 0 : i32
    return %arg0, %c0_i32, %arg1 : i32, i32, i32
  }
  func.func @transform_2(%arg0: i32, %arg1: i32) -> (i32, i32, i32, i32) {
    %c0_i32 = arith.constant 0 : i32
    %c0_i32_0 = arith.constant 0 : i32
    %c0_i32_1 = arith.constant 0 : i32
    return %arg0, %arg1, %c0_i32, %c0_i32_0 : i32, i32, i32, i32
  }
}

</mosaic_0001>

<bundles_post_ra>
// kernel: tpu_custom_call.1
= control target key start
LH: loop header
LB: loop body
LE: loop exit
PB: predicated region body
PF: predicated region fallthrough
CT: control target
= control target key end

     0   :  { %s930_s0 = inlined_call_operand.hbm [shape: f32[2,8,1024], index: 0, kind: input, shape index: {}]   ;;  %s931_s1 = inlined_call_operand.hbm [shape: s32[2,1,1024], index: 1, kind: input, shape index: {}]   ;;  %s932_s2 = inlined_call_operand.hbm [shape: f32[2,4,8,128], index: 2, kind: output, shape index: {}]  }
   0x1   :  { %934 = sst [smem:[#allocation12_spill]] %s930_s0 }
   0x2   :  { %7 = vsyncpa [#allocation3], 0 }
   0x3   :  { %9 = vsyncpa [#allocation3 + $0x1], 0 }
   0x4   :  { %10 = vsyncpa [#allocation6], 0 }
   0x5   :  { %12 = vsyncpa [#allocation6 + $0x1], 0 }
   0x6   :  { %13 = vsyncpa [#allocation4], 0 }
   0x7   :  { %15 = vsyncpa [#allocation4 + $0x1], 0  ;;  %s738_s9 = smov 0   ;;  %s740_s10 = smov 0  }
   0x8   :  { %s742_s11 = smov 0   ;;  %s744_s12 = smov 0  }
   0x9   :  { %s746_s13 = smov 0   ;;  %s748_s14 = smov 0  }
   0xa   :  { %s750_s15 = smov 0   ;;  %s752_s16 = smov 0  }
   0xb LB: > { %s448_s17 = sadd.s32 4294967295, %s718_s16   ;;  %s449_s18 = sadd.s32 4294967294, %s718_s16   ;;  %s718_s16 = sphi %s752_s16, %s21_s16   ;;  %s714_s15 = sphi %s750_s15, %s950_s15   ;;  %s710_s14 = sphi %s748_s14, %s949_s14   ;;  %s706_s13 = sphi %s746_s13, %s948_s13   ;;  %s702_s12 = sphi %s744_s12, %s947_s12   ;;  %s698_s11 = sphi %s742_s11, %s946_s11   ;;  %s694_s10 = sphi %s740_s10, %s945_s10   ;;  %s690_s9 = sphi %s738_s9, %s944_s9  }
   0xc   : > { %s30_s19 = sadd.s32 1, %s710_s14  ;;  %s33_s20 = sadd.s32 1, %s714_s15 }
   0xd   : > { %p31_p0 = scmp.ge.s32.totalorder %s30_s19, 4  ;;  %s42_s21 = sadd.s32 1, %s698_s11 }
   0xe   : > { %p49_p1 = scmp.ne.s32.totalorder %s698_s11, %s694_s10  ;;  %p50_p2 = scmp.eq.s32.totalorder %s718_s16, 0 }
   0xf   : > { %s952_s19 = smov (%p31_p0, %s30_s19), 0  ;;  %s954_s20 = smov (!%p31_p0, %s33_s20), %s714_s15 }
  0x10   : > { %s38_s22 = ssub.s32 %s710_s14, %s952_s19  ;;  %p791_p3 = por %p50_p2, %p49_p1 }
  0x11   : > { %p35_p4 = scmp.ge.s32.totalorder %s954_s20, 2  ;;  %p55_p5 = scmp.ne.s32.totalorder %s694_s10, %s690_s9 }
  0x12   : > { %p56_p6 = scmp.eq.s32.totalorder %s448_s17, 0  ;;  %p109_p7 = scmp.eq.s32.totalorder %s448_s17, 7 }
  0x13   : > { %s956_s20 = smov (%p35_p4, %s954_s20), 0  ;;  %p115_p10 = scmp.eq.s32.totalorder %s449_s18, 7 }
  0x14   : > { %936 = sst [smem:[#allocation11_spill]] %s956_s20  ;;  %p799_p8 = por %p56_p6, %p55_p5 }
  0x15   : > { %p803_p9 = por %p109_p7, %p49_p1  ;;  %s37_s26 = ssub.s32 %s714_s15, %s956_s20 }
  0x16   : > { %s39_s27 = sor.u32 %s38_s22, %s37_s26  ;;  %p809_p12 = por %p115_p10, %p55_p5 }
  0x17   : > { %p40_p11 = scmp.eq.s32.totalorder %s39_s27, 0  ;;  %p488_p13 = scmp.lt.s32.totalorder %s718_s16, 8 }
  0x18   : > { %s815_s29 = sand.u32 1, %s698_s11   ;;  %s453_s4 = sshll.u32 %s710_s14, 1 }
  0x19   : > { %s818_s30 = scalar_select %p40_p11, %s698_s11, %s42_s21  }
  0x1a   : > { %s452_s3 = sshll.u32 %s815_s29, 4  ;;  %s454_s5 = sshll.u32 %s714_s15, 3 }
  0x1b   : > { %s139_s6 = scalar_lea.vmem [#allocation2], %s452_s3  ;;  %s145_s8 = sadd.s32 %s454_s5, %s453_s4 }
  0x1c   : > { %s149_s7 = sshll.u32 %s139_s6, 4  ;;  %s455_s17 = sshll.u32 %s145_s8, 7  ;;  %s150_s7 = int_to_ptr.vmem [resolvable:$true] %s149_s7 }
  0x1d   : > { %p825_p0 = pnand %p488_p13, %p791_p3  ;;  %s941_s0 = sld [smem:[#allocation12_spill]] }
  0x1e   : > { %p460_p1 = scmp.ge.s32.totalorder %s718_s16, 1  ;;  %p175_p2 = scmp.lt.s32.totalorder %s718_s16, 9 }
  0x1f   : > { %s136_s27 = scalar_lea.sflag [#allocation3], %s815_s29  ;;  %p564_p4 = pneg %p825_p0 }
  0x20   : > { %s575_s3 = scalar_lea.vmem %s150_s7, 256  ;;  %s720_s23 = smov [#allocation2]  }
  0x21   : > { %p576_p5 = scmp.ne.s32.totalorder %s150_s7, %s575_s3  ;;  %s580_s4 = sshll.u32 %s720_s23, 4  ;;  %s581_s4 = int_to_ptr.vmem [resolvable:$false] %s580_s4 }
  0x22   : > { %s582_s5 = scalar_lea.vmem %s581_s4, 512  ;;  %p583_p7 = scmp.lt.s32.totalorder %s150_s7, %s581_s4 }
  0x23   : > { %s147_s21 = scalar_lea.hbm %s941_s0, %s455_s17  ;;  %p578_p6 = pnand %p576_p5, %p564_p4 }
  0x24   : > { %p584_p10 = scmp.lt.s32.totalorder %s582_s5, %s575_s3 }
  0x25   : > { %p579_p3 = pneg %p578_p6 }
  0x26   : > { %p585_p11 = por %p584_p10, %p583_p7 }
  0x28   : > { %p586_p13 = pnand %p585_p11, %p579_p3 }
  0x2a   : > { %589 = shalt.err (!%p586_p13)
}
  0x2b   : > { %480 = dma.hbm_to_vmem [thread:$0]  (!%p825_p0), %s147_s21, 256, %s150_s7, %s136_s27  }
  0x2c   : > { %p846_p5 = pnand %p460_p1, %p175_p2  ;;  %s456_s17 = sshll.u32 %s815_s29, 1 }
  0x2d   : > { %s459_s22 = sshll.u32 %s145_s8, 4  ;;  %s160_s4 = scalar_lea.vmem [#allocation5], %s456_s17 }
  0x2e   : > { %s168_s23 = scalar_lea.hbm %s931_s1, %s459_s22  ;;  %s170_s5 = sshll.u32 %s160_s4, 4  ;;  %s171_s5 = int_to_ptr.vmem [resolvable:$true] %s170_s5 }
  0x2f   : > { %s157_s0 = scalar_lea.sflag [#allocation6], %s815_s29  ;;  %s603_s20 = scalar_lea.vmem %s171_s5, 32 }
  0x30   : > { %p604_p6 = scmp.ne.s32.totalorder %s171_s5, %s603_s20  ;;  %s721_s7 = smov [#allocation5]  }
  0x31   : > { %s608_s21 = sshll.u32 %s721_s7, 4  ;;  %s609_s21 = int_to_ptr.vmem [resolvable:$false] %s608_s21 }
  0x32   : > { %p606_p3 = pnand %p604_p6, %p564_p4  ;;  %s610_s27 = scalar_lea.vmem %s609_s21, 64 }
  0x33   : > { %p611_p1 = scmp.lt.s32.totalorder %s171_s5, %s609_s21  ;;  %p612_p2 = scmp.lt.s32.totalorder %s610_s27, %s603_s20 }
  0x34   : > { %p607_p7 = pneg %p606_p3 }
  0x35   : > { %p613_p10 = por %p612_p2, %p611_p1 }
  0x37   : > { %p614_p11 = pnand %p613_p10, %p607_p7 }
  0x39   : > { %617 = shalt.err (!%p614_p11)
}
  0x3a   : > { %483 = dma.hbm_to_vmem [thread:$0]  (!%p825_p0), %s168_s23, 32, %s171_s5, %s157_s0  }
  0x3b   : > { %179 = sbr.rel (%p846_p5) target bundleno = 349 (0x15d), region = 28  ;;  %s863_s29 = sand.u32 (!%p846_p5), 1, %s694_s10  }
  0x3c   : > { %s461_s8 = sshll.u32 (!%p846_p5), %s863_s29, 4  ;;  %s182_s17 = scalar_lea.sflag (!%p846_p5), [#allocation3], %s863_s29 }
  0x3d   : > { %s185_s22 = scalar_lea.vmem (!%p846_p5), [#allocation2], %s461_s8 }
  0x40   : > { %677 = dma.done.wait (%p799_p8), %s182_s17, 256  }
  0x41   : > { %679 = vsyncadd (%p799_p8), %s182_s17, 4294967040  ;;  %s462_s0 = sshll.u32 %s863_s29, 1  ;;  %s191_s20 = scalar_lea.sflag [#allocation6], %s863_s29 }
  0x42   : > { %s194_s18 = scalar_lea.vmem [#allocation5], %s462_s0 }
  0x43   : > { %681 = dma.done.wait (%p799_p8), %s191_s20, 32  }
  0x44   : > { %683 = vsyncadd (%p799_p8), %s191_s20, 4294967264  ;;  %v222_v0 = vld [vmem:[%s185_s22] sm:$0xff]  ;;  %v223_v1 = vld [vmem:[%s185_s22 + $0x8] sm:$0xff]  ;;  %v259_v12 = vlaneseq  ;;  %vm305_vm2 = vcmask 1040384   ;;  %s463_s24 = sshll.u32 %s863_s29, 3  ;;  %s465_s6 = sshll.u32 %s706_s13, 2 }
  0x45   : > { %v224_v2 = vrot.slane %v222_v0, 4  ;;  %v230_v3 = vrot.slane %v223_v1, 4  ;;  %v258_v21 = vld [vmem:[%s194_s18] sm:$0x3]  ;;  %s332_s26 = sadd.s32 %s702_s12, %s465_s6  ;;  %s219_s3 = scalar_lea.vmem [#allocation7], %s463_s24 }
  0x46   : > { %v260_v17 = vshrl.u32 %v259_v12, 7  ;;  %s336_s23 = sshll.u32 %s219_s3, 4  ;;  %s466_s4 = sshll.u32 %s332_s26, 7  ;;  %s880_s23 = int_to_ptr.vmem [resolvable:$true] %s336_s23 }
  0x47   : > { %v225_v4 = vmax.f32 %v222_v0, %v224_v2  ;;  %v231_v5 = vmax.f32 %v223_v1, %v230_v3  ;;  %s334_s27 = scalar_lea.hbm %s932_s2, %s466_s4  ;;  %s321_s8 = scalar_lea.sflag [#allocation4], %s863_s29 }
  0x48   : > { %v263_v20 = vsub.s32 0, %v260_v17  ;;  %v267_v22 = vsub.s32 1, %v260_v17  ;;  %s618_s17 = scalar_lea.vmem %s880_s23, 128  ;;  %s722_s12 = smov [#allocation7]  }
  0x49   : > { %v226_v6 = vrot.slane %v225_v4, 2  ;;  %v232_v7 = vrot.slane %v231_v5, 2  ;;  %p619_p8 = scmp.ne.s32.totalorder %s880_s23, %s618_s17  ;;  %s622_s13 = sshll.u32 %s722_s12, 4  ;;  %s623_s13 = int_to_ptr.vmem [resolvable:$false] %s622_s13 }
  0x4a   : > { %v264_v23 = vrot.slane %v258_v21, %v263_v20  ;;  %v268_v24 = vrot.slane %v258_v21, %v267_v22  ;;  %s624_s22 = scalar_lea.vmem %s623_s13, 256  ;;  %p625_p13 = scmp.lt.s32.totalorder %s880_s23, %s623_s13 }
  0x4b   : > { %v227_v8 = vmax.f32 %v225_v4, %v226_v6  ;;  %v233_v9 = vmax.f32 %v231_v5, %v232_v7  ;;  %p620_p0 = pnand %p619_p8, %p803_p9  ;;  %p626_p5 = scmp.lt.s32.totalorder %s624_s22, %s618_s17 }
  0x4c   : > { %vm269_vm0 = vcmp.eq.s32.totalorder %v260_v17, %v264_v23  ;;  %vm270_vm1 = vcmp.eq.s32.totalorder %v260_v17, %v268_v24 }
  0x4d   : > { %v228_v10 = vrot.slane %v227_v8, 1  ;;  %v234_v11 = vrot.slane %v233_v9, 1  ;;  %p621_p4 = pneg %p620_p0  ;;  %p627_p6 = por %p626_p5, %p625_p13 }
  0x4f   : > { %v229_v13 = vmax.f32 %v227_v8, %v228_v10  ;;  %v235_v14 = vmax.f32 %v233_v9, %v234_v11  ;;  %p628_p3 = pnand %p627_p6, %p621_p4 }
  0x51   : > { %v236_v15 = vsub.f32 %v222_v0, %v229_v13  ;;  %v237_v16 = vsub.f32 %v223_v1, %v235_v14 }
  0x53   : > { %v238_v18 = vmul.f32 1.442695, %v236_v15  ;;  %v240_v19 = vmul.f32 1.442695, %v237_v16  ;;  %v271_v25 = vsel %vm269_vm0, %v236_v15, 0.0  ;;  %v272_v26 = vsel %vm270_vm1, %v237_v16, 0.0 }
  0x54   : > { %v273_v30 = vrot.slane %v271_v25, 4  ;;  %v279_v32 = vrot.slane %v272_v26, 4  ;;  %v285_v34 = vrot.slane %v236_v15, 4  ;;  %v291_v36 = vrot.slane %v237_v16, 4 }
  0x55   : > { %554 = vpow2.f32 %v238_v18 }
  0x56   : > { %556 = vpow2.f32 %v240_v19  ;;  %v274_v38 = vadd.f32 %v273_v30, %v271_v25  ;;  %v280_v40 = vadd.f32 %v279_v32, %v272_v26  ;;  %v286_v42 = vadd.f32 %v285_v34, %v236_v15 }
  0x57   : > { %v292_v44 = vadd.f32 %v291_v36, %v237_v16 }
  0x58   : > { %v275_v46 = vrot.slane %v274_v38, 2  ;;  %v281_v48 = vrot.slane %v280_v40, 2  ;;  %v287_v50 = vrot.slane %v286_v42, 2 }
  0x59   : > { %v293_v52 = vrot.slane %v292_v44, 2 }
  0x5a   : > { %v276_v53 = vadd.f32 %v275_v46, %v274_v38  ;;  %v282_v54 = vadd.f32 %v281_v48, %v280_v40  ;;  %v288_v55 = vadd.f32 %v287_v50, %v286_v42 }
  0x5b   : > { %v294_v56 = vadd.f32 %v293_v52, %v292_v44 }
  0x5c   : > { %v277_v57 = vrot.slane %v276_v53, 1  ;;  %v283_v58 = vrot.slane %v282_v54, 1  ;;  %v289_v59 = vrot.slane %v288_v55, 1 }
  0x5d   : > { %v295_v60 = vrot.slane %v294_v56, 1 }
  0x5e   : > { %v278_v61 = vadd.f32 %v277_v57, %v276_v53  ;;  %v284_v62 = vadd.f32 %v283_v58, %v282_v54  ;;  %v290_v63 = vadd.f32 %v289_v59, %v288_v55 }
  0x5f   : > { %v296_v0 = vadd.f32 %v295_v60, %v294_v56 }
  0x60   : > { %v297_v1 = vmul.f32 0.8857143, %v278_v61  ;;  %v298_v3 = vmul.f32 0.8857143, %v284_v62  ;;  %v301_v6 = vmul.f32 0.014285714, %v290_v63 }
  0x61   : > { %v302_v8 = vmul.f32 0.014285714, %v296_v0 }
  0x62   : > { %v555_v27 = vpop.eup %554 }
  0x63   : > { %v557_v28 = vpop.eup %556  ;;  %v242_v29 = vrot.slane %v555_v27, 4 }
  0x64   : > { %v248_v31 = vrot.slane %v557_v28, 4 }
  0x65   : > { %v243_v33 = vadd.f32 %v555_v27, %v242_v29 }
  0x66   : > { %v249_v35 = vadd.f32 %v557_v28, %v248_v31 }
  0x67   : > { %v244_v37 = vrot.slane %v243_v33, 2 }
  0x68   : > { %v250_v39 = vrot.slane %v249_v35, 2 }
  0x69   : > { %v245_v41 = vadd.f32 %v244_v37, %v243_v33 }
  0x6a   : > { %v251_v43 = vadd.f32 %v250_v39, %v249_v35 }
  0x6b   : > { %v246_v45 = vrot.slane %v245_v41, 1 }
  0x6c   : > { %v252_v47 = vrot.slane %v251_v43, 1 }
  0x6d   : > { %v247_v49 = vadd.f32 %v246_v45, %v245_v41 }
  0x6e   : > { %v253_v51 = vadd.f32 %v252_v47, %v251_v43 }
  0x6f   : > { %558 = vlog2.f32 %v247_v49 }
  0x70   : > { %560 = vlog2.f32 %v253_v51 }
  0x7c   : > { %v559_v2 = vpop.eup %558 }
  0x7d   : > { %v561_v4 = vpop.eup %560  ;;  %v255_v5 = vmul.f32 0.6931472, %v559_v2 }
  0x7e   : > { %v257_v7 = vmul.f32 0.6931472, %v561_v4 }
  0x7f   : > { %v299_v9 = vsub.f32 %v255_v5, %v297_v1 }
  0x80   : > { %v300_v10 = vsub.f32 %v257_v7, %v298_v3 }
  0x81   : > { %v303_v11 = vsub.f32 %v299_v9, %v301_v6 }
  0x82   : > { %v304_v12 = vsub.f32 %v300_v10, %v302_v8 }
  0x83   : > { %v306_v13 = vsel %vm305_vm2, %v303_v11, 0.0 }
  0x84   : > { %v307_v14 = vsel %vm305_vm2, %v304_v12, 0.0 }
  0x85   : > { %v308_v15 = vadd.f32 %v307_v14, %v306_v13 }
  0x87   : > { %309 = vadd.xlane.f32.xlu0 %v308_v15 }
 0x110   : > { %v310_v16 = vpop.xlane.xlu0 %309 }
 0x111   : > { %v311_v17 = vrot.slane %v310_v16, 4 }
 0x113   : > { %v312_v18 = vadd.f32 %v311_v17, %v310_v16 }
 0x115   : > { %v313_v19 = vrot.slane %v312_v18, 2 }
 0x117   : > { %v314_v20 = vadd.f32 %v313_v19, %v312_v18 }
 0x119   : > { %v315_v21 = vrot.slane %v314_v20, 1 }
 0x11b   : > { %v316_v22 = vadd.f32 %v315_v21, %v314_v20 }
 0x11d   : > { %469 = vpush %v316_v22 }
 0x14e   : > { %s470_s5 = spop %469 }
 0x14f   : > { %v318_v23 = vstv %s470_s5 }
 0x150   : > { %319 = vst [vmem:[%s219_s3] sm:$0xff] %v318_v23 }
 0x151   : > { %631 = shalt.err (!%p628_p3)
}
 0x152   : > { %s632_s0 = scalar_lea.hbm %s334_s27, 128  ;;  %s636_s18 = scalar_lea.hbm %s932_s2, 1024 }
 0x153   : > { %p633_p7 = scmp.ne.s32.totalorder %s334_s27, %s632_s0  ;;  %p637_p10 = scmp.lt.s32.totalorder %s334_s27, %s932_s2 }
 0x154   : > { %p638_p11 = scmp.lt.s32.totalorder %s636_s18, %s632_s0 }
 0x155   : > { %p634_p1 = pnand %p633_p7, %p803_p9 }
 0x156   : > { %p639_p8 = por %p638_p11, %p637_p10 }
 0x157   : > { %p635_p2 = pneg %p634_p1 }
 0x159   : > { %p640_p0 = pnand %p639_p8, %p635_p2 }
 0x15b   : > { %643 = shalt.err (!%p640_p0)
}
 0x15c   : > { %475 = dma.vmem_to_hbm [thread:$0]  (%p803_p9), %s880_s23, 128, %s334_s27, %s321_s8  }
 0x15d PF: > { %p489_p4 = scmp.ge.s32.totalorder %s718_s16, 2  ;;  %s348_s26 = sand.u32 1, %s690_s9  }
 0x15e   : > { %s349_s3 = scalar_lea.sflag [#allocation4], %s348_s26 }
 0x15f   : > { %p485_p13 = pnand %p489_p4, %p809_p12 }
 0x161   : > { %p486_p5 = pneg %p485_p13 }
 0x163   : > { %685 = dma.done.wait (%p486_p5), %s349_s3, 128  }
 0x164   : > { %687 = vsyncadd (%p486_p5), %s349_s3, 4294967168  ;;  %s21_s16 = sadd.s32 1, %s718_s16   ;;  %s943_s25 = sld [smem:[#allocation11_spill]] }
 0x165   : > { %p18_p6 = scmp.ge.s32.totalorder %s21_s16, 10   ;;  %s944_s9 = smov %s694_s10 }
 0x166   : > { %s945_s10 = smov %s698_s11  ;;  %s946_s11 = smov %s818_s30 }
 0x167   : > { %s947_s12 = smov %s710_s14  ;;  %s948_s13 = smov %s714_s15 }
 0x168   : > { %s949_s14 = smov %s952_s19  ;;  %20 = sbr.rel (!%p18_p6) target bundleno = 11 (0xb), region = 86 }
 0x16a   : > { %s950_s15 = smov %s943_s25 }
 0x16d   :  { %354 = vsyncpa [#allocation3], 1 }
 0x16e   :  { %356 = vsyncpa [#allocation3 + $0x1], 1 }
 0x16f   :  { %357 = vsyncpa [#allocation6], 1 }
 0x170   :  { %359 = vsyncpa [#allocation6 + $0x1], 1 }
 0x171   :  { %360 = vsyncpa [#allocation4], 1 }
 0x172   :  { %362 = vsyncpa [#allocation4 + $0x1], 1 }

</bundles_post_ra>
